<compile_context>
chip_gen: v7x
topology: tpu7x:2x2x1
jax: 0.10.0
libtpu: 0.0.40
codegen_flags: <defaults>
</compile_context>

<pallas_src>
import math

import jax
import jax.numpy as jnp
from jax.experimental import pallas as pl
from jax.experimental.pallas import tpu as pltpu  # noqa: F401  (kept for parity)


# -----------------------------------------------------------------------------
# Shared per-point feature helper (stand-in PointNet2 backbone + fc_layer)
# -----------------------------------------------------------------------------
def _point_feats(x, w1, b1, w2, b2, wfc, bns, bnb):
    # pcs.repeat(1, 1, 2) @ W is folded at init into w1 = W[:3] + W[3:].
    h = jnp.dot(x, w1, preferred_element_type=jnp.float32) + b1          # f32, K=3
    h = jnp.maximum(h, 0.0)
    h = jnp.dot(h.astype(jnp.bfloat16), w2,
                preferred_element_type=jnp.float32) + b2                 # bf16 weights
    h = jnp.maximum(h, 0.0)
    # fc_layer: Conv1d(128, feat_dim, 1, bias=False) + BatchNorm(eval) + ReLU
    f = jnp.dot(h.astype(jnp.bfloat16), wfc, preferred_element_type=jnp.float32)
    return jnp.maximum(f * bns + bnb, 0.0)                               # (B*N, C) f32


# -----------------------------------------------------------------------------
# Kernel A: affordance-only path (it < train_traj_start)
# -----------------------------------------------------------------------------
def affordance_kernel(x_ref, pn_w1, pn_b1, pn_w2, pn_b2, fc_w, bn_s, bn_b,
                      aff_w, aff_b, aff_ref):
    f = _point_feats(x_ref[...], pn_w1[...], pn_b1[...], pn_w2[...], pn_b2[...],
                     fc_w[...], bn_s[...], bn_b[...])
    # affordance head: Dropout(eval identity) + 1x1 conv -> logits
    aff_ref[...] = jnp.dot(f, aff_w[...],
                           preferred_element_type=jnp.float32) + aff_b[...]


# -----------------------------------------------------------------------------
# Kernel B: fully fused trajectory forward
# -----------------------------------------------------------------------------
def fused_kernel(x_ref, cp_ref, trajf_ref, trajtm_ref, noise_ref,
                 pn_w1, pn_b1, pn_w2, pn_b2, fc_w, bn_s, bn_b,
                 aff_w, aff_b, cp_w, cp_b,
                 r1s, r1c, r1b, r2w, r2b, r3w, r3b,
                 e1s, e1c, etw, e1b, e2w, e2b, mu_w, mu_b, lv_w, lv_b,
                 gin_w, wih_s, wih_z, whh, lstm_b, pos_w, pos_b,
                 aff_ref, rot_ref, recon_ref, mu_ref, lv_ref):
    bf16 = jnp.bfloat16
    B = cp_ref.shape[0]
    N = x_ref.shape[0] // B
    H = whh.shape[0]
    Tm1 = trajtm_ref.shape[0] // B

    # ---- per-point features, all B*N points in one MXU pass (stay in VMEM) ----
    f = _point_feats(x_ref[...], pn_w1[...], pn_b1[...], pn_w2[...], pn_b2[...],
                     fc_w[...], bn_s[...], bn_b[...])                    # (B*N, C) f32

    # ---- affordance logits: computed ONCE, reused for the pooling mask ----
    logits = jnp.dot(f, aff_w[...],
                     preferred_element_type=jnp.float32) + aff_b[...]    # (B*N, 1)
    aff_ref[...] = logits

    # ---- affordance-conditioned masked max pooling ----
    # sigmoid vectorised over the whole batch; exact divide for the threshold.
    s_all = jax.nn.sigmoid(logits)                                       # (B*N, 1)
    fs_rows = []
    for b in range(B):                                                   # static, small B
        fb = f[b * N:(b + 1) * N]                                        # (N, C)
        sb = s_all[b * N:(b + 1) * N]                                    # (N, 1)
        amin = jnp.min(sb, axis=0, keepdims=True)
        amax = jnp.max(sb, axis=0, keepdims=True)
        norm = (sb - amin) / (amax - amin + 1e-6)                        # exact divide
        # epsilon + "always keep the argmax point" -> never an empty mask
        mask = (norm > 0.3) | (sb >= amax)
        fs_rows.append(jnp.max(jnp.where(mask, fb, -jnp.inf),
                               axis=0, keepdims=True))
    f_s = jnp.concatenate(fs_rows, axis=0)                               # (B, C) f32
    f_s16 = f_s.astype(bf16)

    # ---- mlp_cp ----
    f_cp = jnp.dot(cp_ref[...], cp_w[...],
                   preferred_element_type=jnp.float32) + cp_b[...]       # (B, 32)
    f_cp16 = f_cp.astype(bf16)

    # ---- rotation head: Linear(160,128)+LReLU+Linear(128,32)+LReLU+Linear(32,6)
    h = (jnp.dot(f_s16, r1s[...], preferred_element_type=jnp.float32)
         + jnp.dot(f_cp16, r1c[...], preferred_element_type=jnp.float32)
         + r1b[...])
    h = jax.nn.leaky_relu(h)
    h = jnp.dot(h.astype(bf16), r2w[...],
                preferred_element_type=jnp.float32) + r2b[...]
    h = jax.nn.leaky_relu(h)
    rot_ref[...] = jnp.dot(h, r3w[...],
                           preferred_element_type=jnp.float32) + r3b[...]

    # ---- AllEncoder (mlp_wpt folded into etw / e1b at init) ----
    x = (jnp.dot(f_s16, e1s[...], preferred_element_type=jnp.float32)
         + jnp.dot(trajf_ref[...].astype(bf16), etw[...],
                   preferred_element_type=jnp.float32)
         + jnp.dot(f_cp16, e1c[...], preferred_element_type=jnp.float32)
         + e1b[...])
    x = jax.nn.leaky_relu(x)
    x = jnp.dot(x, e2w[...], preferred_element_type=jnp.float32) + e2b[...]
    mu = jnp.dot(x, mu_w[...], preferred_element_type=jnp.float32) + mu_b[...]
    lv = jnp.dot(x, lv_w[...], preferred_element_type=jnp.float32) + lv_b[...]
    mu_ref[...] = mu
    lv_ref[...] = lv
    z = mu + jnp.exp(lv * 0.5) * noise_ref[...]

    # ---- LSTM decoder ----
    # Hoist the input-to-hidden contribution of ALL timesteps out of the
    # recurrence: one ((T-1)*B, wpt_dim) x (wpt_dim, 4H) matmul, kept as a
    # value (sliced with static indices, no VMEM scratch on the serial path).
    gates_in = jnp.dot(trajtm_ref[...].astype(bf16), gin_w[...],
                       preferred_element_type=jnp.float32)               # (Tm1*B, 4H)
    # time-invariant gate contribution: [f_s, z] columns of W_ih plus all biases
    gc = (jnp.dot(f_s16, wih_s[...], preferred_element_type=jnp.float32)
          + jnp.dot(z.astype(bf16), wih_z[...], preferred_element_type=jnp.float32)
          + lstm_b[...])                                                 # (B, 4H)

    whh_v = whh[...]                                                     # bf16, loaded once
    hprev = jnp.zeros((B, H), jnp.float32)
    cprev = jnp.zeros((B, H), jnp.float32)
    hs = []
    for t in range(Tm1):                                                 # static unroll
        g = (gates_in[t * B:(t + 1) * B, :] + gc
             + jnp.dot(hprev.astype(bf16), whh_v,
                       preferred_element_type=jnp.float32))
        i_g = jax.nn.sigmoid(g[:, 0:H])          # PyTorch gate order: i, f, g, o
        f_g = jax.nn.sigmoid(g[:, H:2 * H])
        g_g = jnp.tanh(g[:, 2 * H:3 * H])
        o_g = jax.nn.sigmoid(g[:, 3 * H:4 * H])
        cprev = f_g * cprev + i_g * g_g
        hprev = o_g * jnp.tanh(cprev)
        hs.append(hprev)                                                 # kept in vregs

    # one combined pos_decoder matmul over all timesteps, time-major output
    hs_all = jnp.concatenate(hs, axis=0)                                 # (Tm1*B, H)
    recon_ref[...] = (jnp.dot(hs_all.astype(bf16), pos_w[...],
                              preferred_element_type=jnp.float32) + pos_b[...])


# -----------------------------------------------------------------------------
# Wrappers
# -----------------------------------------------------------------------------
_AFF_WNAMES = ("pn_w1", "pn_b1", "pn_w2", "pn_b2", "fc_w", "bn_scale", "bn_bias",
               "aff_w", "aff_b")

_FUSED_WNAMES = _AFF_WNAMES + (
    "cp_w", "cp_b",
    "rot_w1_s", "rot_w1_c", "rot_b1", "rot_w2", "rot_b2", "rot_w3", "rot_b3",
    "enc_w1_s", "enc_w1_c", "enc_traj_w", "enc_b1", "enc_w2", "enc_b2",
    "mu_w", "mu_b", "lv_w", "lv_b",
    "lstm_gin_w", "lstm_wih_s", "lstm_wih_z", "lstm_whh", "lstm_b",
    "pos_w", "pos_b")


def affordance_only(params, x):
    BN = x.shape[0]
    return pl.pallas_call(
        affordance_kernel,
        out_shape=jax.ShapeDtypeStruct((BN, 1), jnp.float32),
    )(x, *[params[k] for k in _AFF_WNAMES])


def fused_forward(params, x, contact_point, traj_flat, traj_tm, noise):
    BN = x.shape[0]
    B = contact_point.shape[0]
    Tm1B = traj_tm.shape[0]
    z_dim = params["mu_w"].shape[1]
    wpt_dim = params["pos_b"].shape[1]
    ws = [params[k] for k in _FUSED_WNAMES]
    return pl.pallas_call(
        fused_kernel,
        out_shape=(jax.ShapeDtypeStruct((BN, 1), jnp.float32),        # affordance logits
                   jax.ShapeDtypeStruct((B, 6), jnp.float32),         # rotation
                   jax.ShapeDtypeStruct((Tm1B, wpt_dim), jnp.float32),  # recon (time-major)
                   jax.ShapeDtypeStruct((B, z_dim), jnp.float32),     # mu
                   jax.ShapeDtypeStruct((B, z_dim), jnp.float32)),    # logvar
    )(x, contact_point, traj_flat, traj_tm, noise, *ws)


# -----------------------------------------------------------------------------
# Parameter init (deterministic, synthetic; folds mlp_wpt at init; bf16 weights)
# -----------------------------------------------------------------------------
def _lin(key, fan_in, fan_out):
    kw, kb = jax.random.split(key)
    s = 1.0 / math.sqrt(fan_in)
    w = jax.random.uniform(kw, (fan_in, fan_out), jnp.float32, -s, s)
    b = jax.random.uniform(kb, (1, fan_out), jnp.float32, -s, s)
    return w, b


def init_params(key, num_steps, pcd_dim=128, wpt_feat=32, cp_feat=32,
                hidden=128, z_dim=64, wpt_dim=9):
    ks = jax.random.split(key, 16)
    bf = lambda w: w.astype(jnp.bfloat16)
    p = {}
    # stand-in PointNet2 per-point MLP + original fc_layer + affordance head
    w1, p["pn_b1"] = _lin(ks[0], 6, 64)
    # pcs.repeat(1,1,2) @ W1 == pcs @ (W1[:3] + W1[3:]) -> fold at init
    p["pn_w1"] = w1[0:3] + w1[3:6]
    w2, p["pn_b2"] = _lin(ks[1], 64, pcd_dim)
    p["pn_w2"] = bf(w2)
    p["fc_w"] = bf(_lin(ks[2], pcd_dim, pcd_dim)[0])
    p["bn_scale"] = jnp.ones((1, pcd_dim), jnp.float32)
    p["bn_bias"] = jnp.zeros((1, pcd_dim), jnp.float32)
    p["aff_w"], p["aff_b"] = _lin(ks[3], pcd_dim, 1)          # f32: mask precision
    # mlp_cp / mlp_wpt
    p["cp_w"], p["cp_b"] = _lin(ks[4], 3, cp_feat)
    wpt_w, wpt_b = _lin(ks[5], wpt_dim, wpt_feat)
    # rotation head (first layer split by input block: f_s | f_cp)
    w, p["rot_b1"] = _lin(ks[6], pcd_dim + cp_feat, 128)
    p["rot_w1_s"], p["rot_w1_c"] = bf(w[:pcd_dim]), bf(w[pcd_dim:])
    w2r, p["rot_b2"] = _lin(ks[7], 128, 32)
    p["rot_w2"] = bf(w2r)
    p["rot_w3"], p["rot_b3"] = _lin(ks[8], 32, 6)
    # AllEncoder (mlp1 split by input block: f_s | traj_feat | f_cp)
    traj_feat_dim = wpt_feat * num_steps
    w, b1 = _lin(ks[9], pcd_dim + traj_feat_dim + cp_feat, hidden)
    p["enc_w1_s"] = bf(w[:pcd_dim])
    e1t = w[pcd_dim:pcd_dim + traj_feat_dim]                  # (T*wf, hidden) f32
    p["enc_w1_c"] = bf(w[pcd_dim + traj_feat_dim:])
    # fold mlp_wpt (pure Linear -> exact) into the encoder traj branch:
    #   mlp_wpt(traj).reshape(B,-1) @ e1t == traj_flat @ (blockdiag(wpt_w) @ e1t)
    #                                        + tile(wpt_b, T) @ e1t
    blk = jnp.zeros((num_steps * wpt_dim, num_steps * wpt_feat), jnp.float32)
    for t in range(num_steps):
        blk = blk.at[t * wpt_dim:(t + 1) * wpt_dim,
                     t * wpt_feat:(t + 1) * wpt_feat].set(wpt_w)
    p["enc_traj_w"] = bf(blk @ e1t)                           # (T*wpt_dim, hidden)
    p["enc_b1"] = b1 + jnp.tile(wpt_b, (1, num_steps)) @ e1t
    p["enc_w2"], p["enc_b2"] = _lin(ks[10], hidden, z_dim)
    p["mu_w"], p["mu_b"] = _lin(ks[11], z_dim, z_dim)
    p["lv_w"], p["lv_b"] = _lin(ks[12], z_dim, z_dim)
    # LSTM decoder (W_ih split by input block: wpt_feat | f_s | z)
    in_size = wpt_feat + pcd_dim + z_dim
    wih, bih = _lin(ks[13], in_size, 4 * hidden)
    whh, bhh = _lin(ks[14], hidden, 4 * hidden)
    wih_w = wih[:wpt_feat]
    p["lstm_wih_s"] = bf(wih[wpt_feat:wpt_feat + pcd_dim])
    p["lstm_wih_z"] = bf(wih[wpt_feat + pcd_dim:])
    p["lstm_whh"] = bf(whh)
    # fold mlp_wpt into the LSTM input-to-hidden path, merge all biases
    p["lstm_gin_w"] = bf(wpt_w @ wih_w)                       # (wpt_dim, 4H)
    p["lstm_b"] = bih + bhh + wpt_b @ wih_w
    posw, p["pos_b"] = _lin(ks[15], hidden, wpt_dim)
    p["pos_w"] = bf(posw)
    return p


# -----------------------------------------------------------------------------
# Forward (mirrors TrajReconPartSegMutualLSTM.forward)
# -----------------------------------------------------------------------------
def forward(params, it, pcs, traj, contact_point, noise, train_traj_start=10000):
    # pcs: (B, N, 3), traj: (B, num_steps, 9), contact_point: (B, 3)
    B, N, _ = pcs.shape
    T = traj.shape[1]
    x = pcs.reshape(B * N, 3)                                 # free reshape

    if it < train_traj_start:
        aff = affordance_only(params, x)                      # (B*N, 1) logits
        affordance = aff.reshape(B, N)[:, None, :]            # torch layout (B,1,N)
        return affordance, None, None, None, None

    traj_flat = traj.reshape(B, T * traj.shape[2])            # (B, T*9)
    # time-major view of the first T-1 waypoints for the LSTM (rows t*B + b)
    traj_tm = jnp.transpose(traj[:, :T - 1, :], (1, 0, 2)).reshape((T - 1) * B, -1)

    aff, rotation, recon_tm, mu, logvar = fused_forward(
        params, x, contact_point, traj_flat, traj_tm, noise)
    affordance = aff.reshape(B, N)[:, None, :]                # (B, 1, N)
    recon_traj = recon_tm.reshape(T - 1, B, -1).transpose(1, 0, 2)  # (B, T-1, 9)
    return affordance, rotation, recon_traj, mu, logvar


if __name__ == "__main__":
    key = jax.random.PRNGKey(0)
    B, N, T, WPT_DIM, Z_DIM = 2, 128, 8, 9, 64
    kp, kx, kt, kc, kn = jax.random.split(key, 5)
    params = init_params(kp, num_steps=T, wpt_dim=WPT_DIM, z_dim=Z_DIM)
    pcs = jax.random.normal(kx, (B, N, 3), jnp.float32)
    traj = jax.random.normal(kt, (B, T, WPT_DIM), jnp.float32)
    contact_point = jax.random.normal(kc, (B, 3), jnp.float32)
    noise = jax.random.normal(kn, (B, Z_DIM), jnp.float32)

    # affordance-only early-return path
    aff_only, r0, rt0, mu0, lv0 = forward(
        params, it=0, pcs=pcs, traj=traj, contact_point=contact_point, noise=noise)
    jax.block_until_ready(aff_only)
    assert aff_only.shape == (B, 1, N)
    assert r0 is None and rt0 is None and mu0 is None and lv0 is None

    # full trajectory path
    affordance, rotation, recon_traj, mu, logvar = forward(
        params, it=20000, pcs=pcs, traj=traj, contact_point=contact_point, noise=noise)
    jax.block_until_ready((affordance, rotation, recon_traj, mu, logvar))

    assert affordance.shape == (B, 1, N)
    assert rotation.shape == (B, 6)
    assert recon_traj.shape == (B, T - 1, WPT_DIM)
    assert mu.shape == (B, Z_DIM) and logvar.shape == (B, Z_DIM)
    print("KERNEL_OK")
</pallas_src>

<mosaic_0001>
module attributes {stable_mosaic.version = 11 : i64} {
  func.func @affordance_kernel(%arg0: memref<256x3xf32, #tpu.memory_space<vmem>>, %arg1: memref<3x64xf32, #tpu.memory_space<vmem>>, %arg2: memref<1x64xf32, #tpu.memory_space<vmem>>, %arg3: memref<64x128xbf16, #tpu.memory_space<vmem>>, %arg4: memref<1x128xf32, #tpu.memory_space<vmem>>, %arg5: memref<128x128xbf16, #tpu.memory_space<vmem>>, %arg6: memref<1x128xf32, #tpu.memory_space<vmem>>, %arg7: memref<1x128xf32, #tpu.memory_space<vmem>>, %arg8: memref<128x1xf32, #tpu.memory_space<vmem>>, %arg9: memref<1x1xf32, #tpu.memory_space<vmem>>, %arg10: memref<256x1xf32, #tpu.memory_space<vmem>>) attributes {dimension_semantics = [], scalar_prefetch = 0 : i64, scratch_operands = 0 : i64, tpu.core_type = #tpu.core_type<tc>} {
    %c0 = arith.constant 0 : index
    %c0_0 = arith.constant 0 : index
    %0 = vector.load %arg0[%c0, %c0_0] : memref<256x3xf32, #tpu.memory_space<vmem>>, vector<256x3xf32>
    %c0_1 = arith.constant 0 : index
    %c0_2 = arith.constant 0 : index
    %1 = vector.load %arg1[%c0_1, %c0_2] : memref<3x64xf32, #tpu.memory_space<vmem>>, vector<3x64xf32>
    %c0_3 = arith.constant 0 : index
    %c0_4 = arith.constant 0 : index
    %2 = vector.load %arg2[%c0_3, %c0_4] : memref<1x64xf32, #tpu.memory_space<vmem>>, vector<1x64xf32>
    %c0_5 = arith.constant 0 : index
    %c0_6 = arith.constant 0 : index
    %3 = vector.load %arg3[%c0_5, %c0_6] : memref<64x128xbf16, #tpu.memory_space<vmem>>, vector<64x128xbf16>
    %c0_7 = arith.constant 0 : index
    %c0_8 = arith.constant 0 : index
    %4 = vector.load %arg4[%c0_7, %c0_8] : memref<1x128xf32, #tpu.memory_space<vmem>>, vector<1x128xf32>
    %c0_9 = arith.constant 0 : index
    %c0_10 = arith.constant 0 : index
    %5 = vector.load %arg5[%c0_9, %c0_10] : memref<128x128xbf16, #tpu.memory_space<vmem>>, vector<128x128xbf16>
    %c0_11 = arith.constant 0 : index
    %c0_12 = arith.constant 0 : index
    %6 = vector.load %arg6[%c0_11, %c0_12] : memref<1x128xf32, #tpu.memory_space<vmem>>, vector<1x128xf32>
    %c0_13 = arith.constant 0 : index
    %c0_14 = arith.constant 0 : index
    %7 = vector.load %arg7[%c0_13, %c0_14] : memref<1x128xf32, #tpu.memory_space<vmem>>, vector<1x128xf32>
    %cst = arith.constant dense<0.000000e+00> : vector<256x64xf32>
    %8 = tpu.matmul %0, %1, %cst {dimension_numbers = #tpu.dot_dimension_numbers<[1], [0], [0], [1], [0, 0, 1, 1], [], []>} : vector<256x3xf32>, vector<3x64xf32>, vector<256x64xf32> -> vector<256x64xf32>
    %9 = vector.broadcast %2 : vector<1x64xf32> to vector<256x64xf32>
    %10 = arith.addf %8, %9 : vector<256x64xf32>
    %cst_15 = arith.constant 0.000000e+00 : f32
    %11 = vector.broadcast %cst_15 : f32 to vector<256x64xf32>
    %12 = arith.maximumf %10, %11 : vector<256x64xf32>
    %13 = arith.truncf %12 : vector<256x64xf32> to vector<256x64xbf16>
    %cst_16 = arith.constant dense<0.000000e+00> : vector<256x128xf32>
    %14 = tpu.matmul %13, %3, %cst_16 {dimension_numbers = #tpu.dot_dimension_numbers<[1], [0], [0], [1], [0, 0, 1, 1], [], []>} : vector<256x64xbf16>, vector<64x128xbf16>, vector<256x128xf32> -> vector<256x128xf32>
    %15 = vector.broadcast %4 : vector<1x128xf32> to vector<256x128xf32>
    %16 = arith.addf %14, %15 : vector<256x128xf32>
    %cst_17 = arith.constant 0.000000e+00 : f32
    %17 = vector.broadcast %cst_17 : f32 to vector<256x128xf32>
    %18 = arith.maximumf %16, %17 : vector<256x128xf32>
    %19 = arith.truncf %18 : vector<256x128xf32> to vector<256x128xbf16>
    %cst_18 = arith.constant dense<0.000000e+00> : vector<256x128xf32>
    %20 = tpu.matmul %19, %5, %cst_18 {dimension_numbers = #tpu.dot_dimension_numbers<[1], [0], [0], [1], [0, 0, 1, 1], [], []>} : vector<256x128xbf16>, vector<128x128xbf16>, vector<256x128xf32> -> vector<256x128xf32>
    %21 = vector.broadcast %6 : vector<1x128xf32> to vector<256x128xf32>
    %22 = arith.mulf %20, %21 : vector<256x128xf32>
    %23 = vector.broadcast %7 : vector<1x128xf32> to vector<256x128xf32>
    %24 = arith.addf %22, %23 : vector<256x128xf32>
    %cst_19 = arith.constant 0.000000e+00 : f32
    %25 = vector.broadcast %cst_19 : f32 to vector<256x128xf32>
    %26 = arith.maximumf %24, %25 : vector<256x128xf32>
    %c0_20 = arith.constant 0 : index
    %c0_21 = arith.constant 0 : index
    %27 = vector.load %arg8[%c0_20, %c0_21] : memref<128x1xf32, #tpu.memory_space<vmem>>, vector<128x1xf32>
    %cst_22 = arith.constant dense<0.000000e+00> : vector<256x1xf32>
    %28 = tpu.matmul %26, %27, %cst_22 {dimension_numbers = #tpu.dot_dimension_numbers<[1], [0], [0], [1], [0, 0, 1, 1], [], []>} : vector<256x128xf32>, vector<128x1xf32>, vector<256x1xf32> -> vector<256x1xf32>
    %c0_23 = arith.constant 0 : index
    %c0_24 = arith.constant 0 : index
    %29 = vector.load %arg9[%c0_23, %c0_24] : memref<1x1xf32, #tpu.memory_space<vmem>>, vector<1x1xf32>
    %30 = vector.broadcast %29 : vector<1x1xf32> to vector<256x1xf32>
    %31 = arith.addf %28, %30 : vector<256x1xf32>
    %c0_25 = arith.constant 0 : index
    %c0_26 = arith.constant 0 : index
    %32 = vector.load %arg10[%c0_25, %c0_26] : memref<256x1xf32, #tpu.memory_space<vmem>>, vector<256x1xf32>
    tpu.vector_store %arg10[%c0_25, %c0_26], %31 {strides = array<i32>} : memref<256x1xf32, #tpu.memory_space<vmem>>, vector<256x1xf32>,
    return
  }
}

</mosaic_0001>

<bundles_post_ra>
// kernel: tpu_custom_call.1
= control target key start
LH: loop header
LB: loop body
LE: loop exit
PB: predicated region body
PF: predicated region fallthrough
CT: control target
= control target key end

     0   :  { %vm202_vm0 = vcmask 1042432   ;;  %vm105_vm1 = vcmask 23552   ;;  %vm509_vm2 = vcmask 523264   ;;  %vm1332_vm3 = vcmask 7168   ;;  %s2473_s1 = inlined_call_operand.vmem [shape: f32[3,64], index: 1, kind: input, shape index: {}]   ;;  %s2474_s0 = inlined_call_operand.vmem [shape: f32[256,3], index: 0, kind: input, shape index: {}]   ;;  %s2475_s3 = inlined_call_operand.vmem [shape: bf16[64,128], index: 3, kind: input, shape index: {}]   ;;  %s2476_s5 = inlined_call_operand.vmem [shape: bf16[128,128], index: 5, kind: input, shape index: {}]   ;;  %s2477_s2 = inlined_call_operand.vmem [shape: f32[1,64], index: 2, kind: input, shape index: {}]   ;;  %s2478_s8 = inlined_call_operand.vmem [shape: f32[128,1], index: 8, kind: input, shape index: {}]   ;;  %s2479_s4 = inlined_call_operand.vmem [shape: f32[1,128], index: 4, kind: input, shape index: {}]   ;;  %s2480_s9 = inlined_call_operand.<no memory space> [shape: f32[1,1], index: 9, kind: input, shape index: {}]   ;;  %s2481_s6 = inlined_call_operand.vmem [shape: f32[1,128], index: 6, kind: input, shape index: {}]   ;;  %s2482_s7 = inlined_call_operand.vmem [shape: f32[1,128], index: 7, kind: input, shape index: {}]   ;;  %s2483_s10 = inlined_call_operand.vmem [shape: f32[256,1], index: 10, kind: output, shape index: {}]  }
   0x1   :  { %v70_v0 = vld [vmem:[%s2473_s1] sm:$0x7]  ;;  %v39_v2 = vld [vmem:[%s2474_s0 + $0x8] sm:$0xff]  ;;  %v40_v3 = vld [vmem:[%s2474_s0 + $0x10] sm:$0xff] }
   0x2   :  { %v38_v1 = vld [vmem:[%s2474_s0] sm:$0xff]  ;;  %1560 = vmatprep.subr.msk.mxu0 %vm202_vm0, %v70_v0  ;;  %v41_v4 = vld [vmem:[%s2474_s0 + $0x18] sm:$0xff]  ;;  %v43_v6 = vld [vmem:[%s2474_s0 + $0x28] sm:$0xff] }
   0x3   :  { %1562 = vmatprep.mubr.msk.f32.mxu0 %vm105_vm1, %v38_v1  ;;  %1561 = vmatpush3.msk.msra.mxu0 %vm202_vm0, %v70_v0  ;;  %v42_v5 = vld [vmem:[%s2474_s0 + $0x20] sm:$0xff]  ;;  %v44_v7 = vld [vmem:[%s2474_s0 + $0x30] sm:$0xff]  ;;  %v45_v8 = vld [vmem:[%s2474_s0 + $0x38] sm:$0xff] }
   0x4   :  { %1563 = vmatmul.mubr.msk.f32.vlgmr.msra.gmra.mrb[0].mxu0 %vm105_vm1, %v39_v2  ;;  %v46_v9 = vld [vmem:[%s2474_s0 + $0x40] sm:$0xff]  ;;  %v47_v11 = vld [vmem:[%s2474_s0 + $0x48] sm:$0xff]  ;;  %v48_v12 = vld [vmem:[%s2474_s0 + $0x50] sm:$0xff] }
   0x5   :  { %1565 = vmatprep.mubr.msk.f32.mxu0 %vm105_vm1, %v40_v3  ;;  %v1826_v10 = vld [vmem:[%s2475_s3] sm:$0xff]   ;;  %v49_v13 = vld [vmem:[%s2474_s0 + $0x58] sm:$0xff]  ;;  %v51_v15 = vld [vmem:[%s2474_s0 + $0x68] sm:$0xff] }
   0x6   :  { %1610 = vmatprep.subr.bf16.mxu1 %v1826_v10  ;;  %v50_v14 = vld [vmem:[%s2474_s0 + $0x60] sm:$0xff]  ;;  %v52_v16 = vld [vmem:[%s2474_s0 + $0x70] sm:$0xff]  ;;  %v53_v17 = vld [vmem:[%s2474_s0 + $0x78] sm:$0xff] }
   0x7   :  { %1611 = vmatpush3.bf16.msra.mxu1 %v1826_v10  ;;  %v54_v18 = vld [vmem:[%s2474_s0 + $0x80] sm:$0xff]  ;;  %v55_v19 = vld [vmem:[%s2474_s0 + $0x88] sm:$0xff]  ;;  %v56_v20 = vld [vmem:[%s2474_s0 + $0x90] sm:$0xff] }
   0x8   :  { %1566 = vmatmul.mubr.msk.f32.gmra.mrb[2].mxu0 %vm105_vm1, %v41_v4  ;;  %v57_v21 = vld [vmem:[%s2474_s0 + $0x98] sm:$0xff]  ;;  %v58_v22 = vld [vmem:[%s2474_s0 + $0xa0] sm:$0xff]  ;;  %v59_v23 = vld [vmem:[%s2474_s0 + $0xa8] sm:$0xff] }
   0x9   :  { %1568 = vmatprep.mubr.msk.f32.mxu0 %vm105_vm1, %v42_v5  ;;  %v60_v24 = vld [vmem:[%s2474_s0 + $0xb0] sm:$0xff]  ;;  %v61_v25 = vld [vmem:[%s2474_s0 + $0xb8] sm:$0xff]  ;;  %v62_v26 = vld [vmem:[%s2474_s0 + $0xc0] sm:$0xff] }
   0xa   :  { %v63_v27 = vld [vmem:[%s2474_s0 + $0xc8] sm:$0xff]  ;;  %v64_v28 = vld [vmem:[%s2474_s0 + $0xd0] sm:$0xff]  ;;  %v65_v29 = vld [vmem:[%s2474_s0 + $0xd8] sm:$0xff] }
   0xb   :  { %v66_v30 = vld [vmem:[%s2474_s0 + $0xe0] sm:$0xff]  ;;  %v67_v31 = vld [vmem:[%s2474_s0 + $0xe8] sm:$0xff]  ;;  %v68_v32 = vld [vmem:[%s2474_s0 + $0xf0] sm:$0xff] }
   0xc   :  { %1569 = vmatmul.mubr.msk.f32.gmra.mrb[4].mxu0 %vm105_vm1, %v43_v6  ;;  %v69_v33 = vld [vmem:[%s2474_s0 + $0xf8] sm:$0xff]  ;;  %v1827_v34 = vld [vmem:[%s2475_s3 + $0x8] sm:$0xff]   ;;  %v1828_v35 = vld [vmem:[%s2475_s3 + $0x10] sm:$0xff]  }
   0xd   :  { %1571 = vmatprep.mubr.msk.f32.mxu0 %vm105_vm1, %v44_v7  ;;  %1612 = vmatprep.subr.bf16.mxu1 %v1827_v34  ;;  %v1829_v36 = vld [vmem:[%s2475_s3 + $0x18] sm:$0xff]   ;;  %v1830_v37 = vld [vmem:[%s2476_s5] sm:$0xff]   ;;  %v1831_v38 = vld [vmem:[%s2476_s5 + $0x8] sm:$0xff]  }
   0xe   :  { %1613 = vmatpush3.bf16.msra.mxu1 %v1827_v34  ;;  %1650 = vmatprep.subr.bf16.mxu0 %v1830_v37  ;;  %v1832_v39 = vld [vmem:[%s2476_s5 + $0x10] sm:$0xff]   ;;  %v1833_v40 = vld [vmem:[%s2476_s5 + $0x18] sm:$0xff]   ;;  %v1834_v41 = vld [vmem:[%s2476_s5 + $0x20] sm:$0xff]  }
   0xf   :  { %1614 = vmatprep.subr.bf16.mxu1 %v1828_v35  ;;  %1651 = vmatpush3.bf16.msra.mxu0 %v1830_v37  ;;  %v1835_v42 = vld [vmem:[%s2476_s5 + $0x28] sm:$0xff]   ;;  %v1836_v43 = vld [vmem:[%s2476_s5 + $0x30] sm:$0xff]   ;;  %v2060_v44 = vld [vmem:[%s2477_s2] ss:$0 sm:$0xff] }
  0x10   :  { %1572 = vmatmul.mubr.msk.f32.gmra.mrb[6].mxu0 %vm105_vm1, %v45_v8  ;;  %1652 = vmatprep.subr.bf16.mxu0 %v1831_v38 }
  0x11   :  { %1574 = vmatprep.mubr.msk.f32.mxu0 %vm105_vm1, %v46_v9 }
  0x12   :  { %1615 = vmatpush3.bf16.msra.mxu1 %v1828_v35 }
  0x13   :  { %1616 = vmatprep.subr.bf16.mxu1 %v1829_v36  ;;  %1653 = vmatpush3.bf16.msra.mxu0 %v1831_v38 }
  0x14   :  { %1575 = vmatmul.mubr.msk.f32.gmra.mrb[8].mxu0 %vm105_vm1, %v47_v11  ;;  %1654 = vmatprep.subr.bf16.mxu0 %v1832_v39 }
  0x15   :  { %1577 = vmatprep.mubr.msk.f32.mxu0 %vm105_vm1, %v48_v12 }
  0x16   :  { %1617 = vmatpush3.bf16.msra.mxu1 %v1829_v36 }
  0x17   :  { %1655 = vmatpush3.bf16.msra.mxu0 %v1832_v39 }
  0x18   :  { %1578 = vmatmul.mubr.msk.f32.gmra.mrb[10].mxu0 %vm105_vm1, %v49_v13  ;;  %1656 = vmatprep.subr.bf16.mxu0 %v1833_v40 }
  0x19   :  { %1580 = vmatprep.mubr.msk.f32.mxu0 %vm105_vm1, %v50_v14 }
  0x1b   :  { %1657 = vmatpush3.bf16.msra.mxu0 %v1833_v40 }
  0x1c   :  { %1581 = vmatmul.mubr.msk.f32.gmra.mrb[12].mxu0 %vm105_vm1, %v51_v15  ;;  %1658 = vmatprep.subr.bf16.mxu0 %v1834_v41 }
  0x1d   :  { %1583 = vmatprep.mubr.msk.f32.mxu0 %vm105_vm1, %v52_v16 }
  0x1f   :  { %1659 = vmatpush3.bf16.msra.mxu0 %v1834_v41 }
  0x20   :  { %1584 = vmatmul.mubr.msk.f32.gmra.mrb[14].mxu0 %vm105_vm1, %v53_v17  ;;  %1660 = vmatprep.subr.bf16.mxu0 %v1835_v42 }
  0x21   :  { %1586 = vmatprep.mubr.msk.f32.mxu0 %vm105_vm1, %v54_v18 }
  0x23   :  { %1661 = vmatpush3.bf16.msra.mxu0 %v1835_v42 }
  0x24   :  { %1587 = vmatmul.mubr.msk.f32.gmra.mrb[16].mxu0 %vm105_vm1, %v55_v19  ;;  %1662 = vmatprep.subr.bf16.mxu0 %v1836_v43 }
  0x25   :  { %1589 = vmatprep.mubr.msk.f32.mxu0 %vm105_vm1, %v56_v20 }
  0x27   :  { %1663 = vmatpush3.bf16.msra.mxu0 %v1836_v43 }
  0x28   :  { %1590 = vmatmul.mubr.msk.f32.gmra.mrb[18].mxu0 %vm105_vm1, %v57_v21 }
  0x29   :  { %1592 = vmatprep.mubr.msk.f32.mxu0 %vm105_vm1, %v58_v22 }
  0x2c   :  { %1593 = vmatmul.mubr.msk.f32.gmra.mrb[20].mxu0 %vm105_vm1, %v59_v23 }
  0x2d   :  { %1595 = vmatprep.mubr.msk.f32.mxu0 %vm105_vm1, %v60_v24 }
  0x30   :  { %1596 = vmatmul.mubr.msk.f32.gmra.mrb[22].mxu0 %vm105_vm1, %v61_v25 }
  0x31   :  { %1598 = vmatprep.mubr.msk.f32.mxu0 %vm105_vm1, %v62_v26 }
  0x34   :  { %1599 = vmatmul.mubr.msk.f32.gmra.mrb[24].mxu0 %vm105_vm1, %v63_v27 }
  0x35   :  { %1601 = vmatprep.mubr.msk.f32.mxu0 %vm105_vm1, %v64_v28 }
  0x38   :  { %1602 = vmatmul.mubr.msk.f32.gmra.mrb[26].mxu0 %vm105_vm1, %v65_v29 }
  0x39   :  { %1604 = vmatprep.mubr.msk.f32.mxu0 %vm105_vm1, %v66_v30 }
  0x3c   :  { %1605 = vmatmul.mubr.msk.f32.gmra.mrb[28].mxu0 %vm105_vm1, %v67_v31 }
  0x3d   :  { %1607 = vmatprep.mubr.msk.f32.mxu0 %vm105_vm1, %v68_v32 }
  0x40   :  { %1608 = vmatmul.mubr.msk.f32.gmra.mrb[30].mxu0 %vm105_vm1, %v69_v33 }
  0xd7   :  { %v1564_v45 = vpop.f32.mrb[0].mxu0 }
  0xd8   :  { %v278_v46 = vadd.f32 %v1564_v45, %v2060_v44  ;;  %v272_v47 = vpop.f32.mrb[1].mxu0 }
  0xd9   :  { %v273_v48 = vadd.f32 %v2060_v44, %v272_v47 }
  0xda   :  { %v432_v49 = vmax.f32 %v278_v46, 0.0 }
  0xdb   :  { %v431_v50 = vmax.f32 %v273_v48, 0.0  ;;  %v1567_v51 = vpop.f32.mrb[2].mxu0 }
  0xdc   :  { %v288_v52 = vadd.f32 %v1567_v51, %v2060_v44  ;;  %v282_v53 = vpop.f32.mrb[3].mxu0 }
  0xdd   :  { %v283_v54 = vadd.f32 %v2060_v44, %v282_v53  ;;  %v463_v55 = vpack.c.bf16 %v432_v49, %v431_v50 }
  0xde   :  { %v434_v56 = vmax.f32 %v288_v52, 0.0 }
  0xdf   :  { %v433_v57 = vmax.f32 %v283_v54, 0.0  ;;  %v1570_v58 = vpop.f32.mrb[4].mxu0  ;;  %1618 = vmatprep.mubr.msk.bf16.mxu1 %vm509_vm2, %v463_v55 }
  0xe0   :  { %v298_v59 = vadd.f32 %v1570_v58, %v2060_v44  ;;  %v292_v60 = vpop.f32.mrb[5].mxu0 }
  0xe1   :  { %v464_v61 = vpack.c.bf16 %v434_v56, %v433_v57  ;;  %v293_v62 = vadd.f32 %v2060_v44, %v292_v60 }
  0xe2   :  { %v436_v63 = vmax.f32 %v298_v59, 0.0 }
  0xe3   :  { %v435_v0 = vmax.f32 %v293_v62, 0.0  ;;  %v1573_v1 = vpop.f32.mrb[6].mxu0  ;;  %1619 = vmatmul.mubr.msk.bf16.vlgmr.msra.gmra.mrb[0].mxu1 %vm509_vm2, %v464_v61 }
  0xe4   :  { %v308_v2 = vadd.f32 %v1573_v1, %v2060_v44  ;;  %v302_v3 = vpop.f32.mrb[7].mxu0 }
  0xe5   :  { %v465_v4 = vpack.c.bf16 %v436_v63, %v435_v0  ;;  %v303_v5 = vadd.f32 %v2060_v44, %v302_v3 }
  0xe6   :  { %v438_v6 = vmax.f32 %v308_v2, 0.0 }
  0xe7   :  { %v437_v7 = vmax.f32 %v303_v5, 0.0  ;;  %v1576_v8 = vpop.f32.mrb[8].mxu0  ;;  %1622 = vmatprep.mubr.msk.bf16.mxu1 %vm509_vm2, %v465_v4 }
  0xe8   :  { %v318_v9 = vadd.f32 %v1576_v8, %v2060_v44  ;;  %v312_v10 = vpop.f32.mrb[9].mxu0 }
  0xe9   :  { %v466_v11 = vpack.c.bf16 %v438_v6, %v437_v7  ;;  %v313_v12 = vadd.f32 %v2060_v44, %v312_v10 }
  0xea   :  { %v440_v13 = vmax.f32 %v318_v9, 0.0 }
  0xeb   :  { %v439_v14 = vmax.f32 %v313_v12, 0.0  ;;  %v1579_v15 = vpop.f32.mrb[10].mxu0  ;;  %1623 = vmatmul.mubr.msk.bf16.gmra.mrb[4].mxu1 %vm509_vm2, %v466_v11 }
  0xec   :  { %v328_v16 = vadd.f32 %v1579_v15, %v2060_v44  ;;  %v322_v17 = vpop.f32.mrb[11].mxu0 }
  0xed   :  { %v467_v18 = vpack.c.bf16 %v440_v13, %v439_v14  ;;  %v323_v19 = vadd.f32 %v2060_v44, %v322_v17 }
  0xee   :  { %v442_v20 = vmax.f32 %v328_v16, 0.0 }
  0xef   :  { %v441_v21 = vmax.f32 %v323_v19, 0.0  ;;  %v1582_v22 = vpop.f32.mrb[12].mxu0  ;;  %1626 = vmatprep.mubr.msk.bf16.mxu1 %vm509_vm2, %v467_v18 }
  0xf0   :  { %v338_v23 = vadd.f32 %v1582_v22, %v2060_v44  ;;  %v332_v24 = vpop.f32.mrb[13].mxu0 }
  0xf1   :  { %v468_v25 = vpack.c.bf16 %v442_v20, %v441_v21  ;;  %v333_v26 = vadd.f32 %v2060_v44, %v332_v24 }
  0xf2   :  { %v444_v27 = vmax.f32 %v338_v23, 0.0 }
  0xf3   :  { %v443_v28 = vmax.f32 %v333_v26, 0.0  ;;  %v1585_v29 = vpop.f32.mrb[14].mxu0  ;;  %1627 = vmatmul.mubr.msk.bf16.gmra.mrb[8].mxu1 %vm509_vm2, %v468_v25 }
  0xf4   :  { %v348_v30 = vadd.f32 %v1585_v29, %v2060_v44  ;;  %v342_v31 = vpop.f32.mrb[15].mxu0 }
  0xf5   :  { %v469_v32 = vpack.c.bf16 %v444_v27, %v443_v28  ;;  %v343_v33 = vadd.f32 %v2060_v44, %v342_v31  ;;  %v1084_v31 = vld [vmem:[%s2478_s8] sm:$0xff] }
  0xf6   :  { %v446_v34 = vmax.f32 %v348_v30, 0.0  ;;  %v1837_v30 = vld [vmem:[%s2476_s5 + $0x38] sm:$0xff]  }
  0xf7   :  { %v445_v35 = vmax.f32 %v343_v33, 0.0  ;;  %v1588_v36 = vpop.f32.mrb[16].mxu0  ;;  %1630 = vmatprep.mubr.msk.bf16.mxu1 %vm509_vm2, %v469_v32  ;;  %1664 = vmatprep.subr.bf16.mxu0 %v1837_v30  ;;  %v1086_v32 = vld [vmem:[%s2478_s8 + $0x10] sm:$0xff] }
  0xf8   :  { %v358_v37 = vadd.f32 %v1588_v36, %v2060_v44  ;;  %v352_v38 = vpop.f32.mrb[17].mxu0  ;;  %1665 = vmatpush3.bf16.msra.mxu0 %v1837_v30  ;;  %v1088_v36 = vld [vmem:[%s2478_s8 + $0x20] sm:$0xff] }
  0xf9   :  { %v470_v39 = vpack.c.bf16 %v446_v34, %v445_v35  ;;  %v353_v40 = vadd.f32 %v2060_v44, %v352_v38  ;;  %v1087_v34 = vld [vmem:[%s2478_s8 + $0x18] sm:$0xff] }
  0xfa   :  { %v448_v41 = vmax.f32 %v358_v37, 0.0  ;;  %v2125_v35 = vpack.c.bf16 %v1087_v34, %v1086_v32  ;;  %v1089_v37 = vld [vmem:[%s2478_s8 + $0x28] sm:$0xff] }
  0xfb   :  { %v447_v42 = vmax.f32 %v353_v40, 0.0  ;;  %v1591_v43 = vpop.f32.mrb[18].mxu0  ;;  %1631 = vmatmul.mubr.msk.bf16.gmra.mrb[12].mxu1 %vm509_vm2, %v470_v39  ;;  %v2134_v38 = vpack.c.bf16 %v1089_v37, %v1088_v36  ;;  %v1090_v39 = vld [vmem:[%s2478_s8 + $0x30] sm:$0xff]  ;;  %v1091_v40 = vld [vmem:[%s2478_s8 + $0x38] sm:$0xff] }
  0xfc   :  { %v368_v45 = vadd.f32 %v1591_v43, %v2060_v44  ;;  %v362_v46 = vpop.f32.mrb[19].mxu0  ;;  %v1093_v43 = vld [vmem:[%s2478_s8 + $0x48] sm:$0xff] }
  0xfd   :  { %v471_v47 = vpack.c.bf16 %v448_v41, %v447_v42  ;;  %v363_v48 = vadd.f32 %v2060_v44, %v362_v46  ;;  %v2144_v41 = vpack.c.bf16 %v1091_v40, %v1090_v39  ;;  %v1092_v42 = vld [vmem:[%s2478_s8 + $0x40] sm:$0xff]  ;;  %v1094_v46 = vld [vmem:[%s2478_s8 + $0x50] sm:$0xff] }
  0xfe   :  { %v450_v49 = vmax.f32 %v368_v45, 0.0  ;;  %v2154_v45 = vpack.c.bf16 %v1093_v43, %v1092_v42 }
  0xff   :  { %v449_v50 = vmax.f32 %v363_v48, 0.0  ;;  %v1594_v51 = vpop.f32.mrb[20].mxu0  ;;  %1634 = vmatprep.mubr.msk.bf16.mxu1 %vm509_vm2, %v471_v47  ;;  %v1095_v47 = vld [vmem:[%s2478_s8 + $0x58] sm:$0xff] }
 0x100   :  { %v378_v52 = vadd.f32 %v1594_v51, %v2060_v44  ;;  %v372_v53 = vpop.f32.mrb[21].mxu0  ;;  %v2164_v48 = vpack.c.bf16 %v1095_v47, %v1094_v46 }
 0x101   :  { %v472_v54 = vpack.c.bf16 %v450_v49, %v449_v50  ;;  %v373_v55 = vadd.f32 %v2060_v44, %v372_v53  ;;  %v1096_v49 = vld [vmem:[%s2478_s8 + $0x60] sm:$0xff]  ;;  %v1097_v50 = vld [vmem:[%s2478_s8 + $0x68] sm:$0xff] }
 0x102   :  { %v452_v56 = vmax.f32 %v378_v52, 0.0  ;;  %v2174_v51 = vpack.c.bf16 %v1097_v50, %v1096_v49  ;;  %v2182_v52 = vld [vmem:[%s2479_s4] ss:$0 sm:$0xff] }
 0x103   :  { %v451_v57 = vmax.f32 %v373_v55, 0.0  ;;  %v1597_v58 = vpop.f32.mrb[22].mxu0  ;;  %1635 = vmatmul.mubr.msk.bf16.gmra.mrb[16].mxu1 %vm509_vm2, %v472_v54 }
 0x104   :  { %v388_v59 = vadd.f32 %v1597_v58, %v2060_v44  ;;  %v382_v60 = vpop.f32.mrb[23].mxu0 }
 0x105   :  { %v473_v61 = vpack.c.bf16 %v452_v56, %v451_v57  ;;  %v383_v62 = vadd.f32 %v2060_v44, %v382_v60 }
 0x106   :  { %v454_v63 = vmax.f32 %v388_v59, 0.0 }
 0x107   :  { %v453_v0 = vmax.f32 %v383_v62, 0.0  ;;  %v1600_v1 = vpop.f32.mrb[24].mxu0  ;;  %1638 = vmatprep.mubr.msk.bf16.mxu1 %vm509_vm2, %v473_v61 }
 0x108   :  { %v398_v2 = vadd.f32 %v1600_v1, %v2060_v44  ;;  %v392_v3 = vpop.f32.mrb[25].mxu0 }
 0x109   :  { %v474_v4 = vpack.c.bf16 %v454_v63, %v453_v0  ;;  %v393_v5 = vadd.f32 %v2060_v44, %v392_v3 }
 0x10a   :  { %v456_v6 = vmax.f32 %v398_v2, 0.0 }
 0x10b   :  { %v455_v7 = vmax.f32 %v393_v5, 0.0  ;;  %v1603_v8 = vpop.f32.mrb[26].mxu0  ;;  %1639 = vmatmul.mubr.msk.bf16.gmra.mrb[20].mxu1 %vm509_vm2, %v474_v4 }
 0x10c   :  { %v408_v9 = vadd.f32 %v1603_v8, %v2060_v44  ;;  %v402_v10 = vpop.f32.mrb[27].mxu0 }
 0x10d   :  { %v475_v11 = vpack.c.bf16 %v456_v6, %v455_v7  ;;  %v403_v12 = vadd.f32 %v2060_v44, %v402_v10 }
 0x10e   :  { %v458_v13 = vmax.f32 %v408_v9, 0.0 }
 0x10f   :  { %v457_v14 = vmax.f32 %v403_v12, 0.0  ;;  %v1606_v15 = vpop.f32.mrb[28].mxu0  ;;  %1642 = vmatprep.mubr.msk.bf16.mxu1 %vm509_vm2, %v475_v11 }
 0x110   :  { %v418_v16 = vadd.f32 %v1606_v15, %v2060_v44  ;;  %v412_v17 = vpop.f32.mrb[29].mxu0 }
 0x111   :  { %v476_v18 = vpack.c.bf16 %v458_v13, %v457_v14  ;;  %v413_v19 = vadd.f32 %v2060_v44, %v412_v17 }
 0x112   :  { %v460_v20 = vmax.f32 %v418_v16, 0.0 }
 0x113   :  { %v459_v21 = vmax.f32 %v413_v19, 0.0  ;;  %v1609_v22 = vpop.f32.mrb[30].mxu0  ;;  %1643 = vmatmul.mubr.msk.bf16.gmra.mrb[24].mxu1 %vm509_vm2, %v476_v18 }
 0x114   :  { %v428_v23 = vadd.f32 %v1609_v22, %v2060_v44  ;;  %v422_v24 = vpop.f32.mrb[31].mxu0 }
 0x115   :  { %v477_v25 = vpack.c.bf16 %v460_v20, %v459_v21  ;;  %v423_v26 = vadd.f32 %v2060_v44, %v422_v24  ;;  %v1085_v44 = vld [vmem:[%s2478_s8 + $0x8] sm:$0xff] }
 0x116   :  { %v462_v27 = vmax.f32 %v428_v23, 0.0  ;;  %v1778_v33 = vpack.c.bf16 %v1085_v44, %v1084_v31 }
 0x117   :  { %v461_v28 = vmax.f32 %v423_v26, 0.0  ;;  %1646 = vmatprep.mubr.msk.bf16.mxu1 %vm509_vm2, %v477_v25 }
 0x118   :  { %1810 = vmatprep.subr.bf16.mxu1 %v1778_v33  ;;  %1779 = vmatprep.subr.bf16.mxu0 %v1778_v33 }
 0x119   :  { %v478_v29 = vpack.c.bf16 %v462_v27, %v461_v28  ;;  %1818 = vmatpush3.bf16.msra.mxu1 %v1778_v33 }
 0x11a   :  { %1811 = vmatprep.subr.bf16.mxu1 %v2125_v35 }
 0x11b   :  { %1647 = vmatmul.mubr.msk.bf16.gmra.mrb[28].mxu1 %vm509_vm2, %v478_v29 }
 0x11d   :  { %1819 = vmatpush3.bf16.msra.mxu1 %v2125_v35 }
 0x11e   :  { %1812 = vmatprep.subr.bf16.mxu1 %v2134_v38 }
 0x121   :  { %1820 = vmatpush3.bf16.msra.mxu1 %v2134_v38 }
 0x122   :  { %1813 = vmatprep.subr.bf16.mxu1 %v2144_v41 }
 0x125   :  { %1821 = vmatpush3.bf16.msra.mxu1 %v2144_v41 }
 0x126   :  { %1814 = vmatprep.subr.bf16.mxu1 %v2154_v45 }
 0x129   :  { %1822 = vmatpush3.bf16.msra.mxu1 %v2154_v45 }
 0x12a   :  { %1815 = vmatprep.subr.bf16.mxu1 %v2164_v48 }
 0x12d   :  { %1823 = vmatpush3.bf16.msra.mxu1 %v2164_v48 }
 0x12e   :  { %1816 = vmatprep.subr.bf16.mxu1 %v2174_v51 }
 0x131   :  { %1824 = vmatpush3.bf16.msra.mxu1 %v2174_v51 }
 0x1b6   :  { %v1620_v53 = vpop.f32.mrb[0].mxu1 }
 0x1b7   :  { %v601_v54 = vadd.f32 %v1620_v53, %v2182_v52  ;;  %v592_v55 = vpop.f32.mrb[1].mxu1 }
 0x1b8   :  { %v593_v56 = vadd.f32 %v2182_v52, %v592_v55  ;;  %v1621_v57 = vpop.f32.mrb[2].mxu1 }
 0x1b9   :  { %v604_v58 = vadd.f32 %v1621_v57, %v2182_v52  ;;  %v595_v59 = vpop.f32.mrb[3].mxu1  ;;  %v721_v61 = vmax.f32 %v601_v54, 0.0 }
 0x1ba   :  { %v596_v60 = vadd.f32 %v2182_v52, %v595_v59  ;;  %v719_v63 = vmax.f32 %v593_v56, 0.0 }
 0x1bb   :  { %v722_v62 = vmax.f32 %v604_v58, 0.0 }
 0x1bc   :  { %v720_v0 = vmax.f32 %v596_v60, 0.0 }
 0x1bd   :  { %v752_v1 = vpack.c.bf16 %v722_v62, %v721_v61 }
 0x1be   :  { %v751_v2 = vpack.c.bf16 %v720_v0, %v719_v63  ;;  %v1624_v3 = vpop.f32.mrb[4].mxu1 }
 0x1bf   :  { %v617_v4 = vadd.f32 %v1624_v3, %v2182_v52  ;;  %v608_v5 = vpop.f32.mrb[5].mxu1 }
 0x1c0   :  { %v609_v6 = vadd.f32 %v2182_v52, %v608_v5  ;;  %v1625_v7 = vpop.f32.mrb[6].mxu1  ;;  %1666 = vmatprep.mubr.bf16.mxu0 %v751_v2 }
 0x1c1   :  { %v620_v8 = vadd.f32 %v1625_v7, %v2182_v52  ;;  %v611_v9 = vpop.f32.mrb[7].mxu1  ;;  %1667 = vmatmul.mubr.bf16.vlgmr.msra.gmra.mrb[32].mxu0 %v752_v1  ;;  %v725_v11 = vmax.f32 %v617_v4, 0.0 }
 0x1c2   :  { %v612_v10 = vadd.f32 %v2182_v52, %v611_v9  ;;  %1781 = vmatpush3.bf16.msra.mxu0 %v1778_v33  ;;  %v723_v13 = vmax.f32 %v609_v6, 0.0 }
 0x1c3   :  { %v726_v12 = vmax.f32 %v620_v8, 0.0  ;;  %1783 = vmatprep.subr.bf16.mxu0 %v2125_v35 }
 0x1c4   :  { %v724_v14 = vmax.f32 %v612_v10, 0.0 }
 0x1c5   :  { %v754_v15 = vpack.c.bf16 %v726_v12, %v725_v11 }
 0x1c6   :  { %v753_v16 = vpack.c.bf16 %v724_v14, %v723_v13  ;;  %v1628_v17 = vpop.f32.mrb[8].mxu1  ;;  %1785 = vmatpush3.bf16.msra.mxu0 %v2125_v35 }
 0x1c7   :  { %v633_v18 = vadd.f32 %v1628_v17, %v2182_v52  ;;  %v624_v19 = vpop.f32.mrb[9].mxu1  ;;  %1787 = vmatprep.subr.bf16.mxu0 %v2134_v38 }
 0x1c8   :  { %v625_v20 = vadd.f32 %v2182_v52, %v624_v19  ;;  %v1629_v21 = vpop.f32.mrb[10].mxu1  ;;  %1670 = vmatprep.mubr.bf16.mxu0 %v753_v16 }
 0x1c9   :  { %v636_v22 = vadd.f32 %v1629_v21, %v2182_v52  ;;  %v627_v23 = vpop.f32.mrb[11].mxu1  ;;  %1671 = vmatmul.mubr.bf16.gmra.mrb[36].mxu0 %v754_v15  ;;  %v729_v25 = vmax.f32 %v633_v18, 0.0 }
 0x1ca   :  { %v628_v24 = vadd.f32 %v2182_v52, %v627_v23  ;;  %1789 = vmatpush3.bf16.msra.mxu0 %v2134_v38  ;;  %v727_v27 = vmax.f32 %v625_v20, 0.0 }
 0x1cb   :  { %v730_v26 = vmax.f32 %v636_v22, 0.0  ;;  %1791 = vmatprep.subr.bf16.mxu0 %v2144_v41 }
 0x1cc   :  { %v728_v28 = vmax.f32 %v628_v24, 0.0 }
 0x1cd   :  { %v756_v29 = vpack.c.bf16 %v730_v26, %v729_v25 }
 0x1ce   :  { %v755_v30 = vpack.c.bf16 %v728_v28, %v727_v27  ;;  %v1632_v31 = vpop.f32.mrb[12].mxu1  ;;  %1793 = vmatpush3.bf16.msra.mxu0 %v2144_v41 }
 0x1cf   :  { %v649_v44 = vadd.f32 %v1632_v31, %v2182_v52  ;;  %v640_v32 = vpop.f32.mrb[13].mxu1  ;;  %1795 = vmatprep.subr.bf16.mxu0 %v2154_v45 }
 0x1d0   :  { %v641_v33 = vadd.f32 %v2182_v52, %v640_v32  ;;  %v1633_v34 = vpop.f32.mrb[14].mxu1  ;;  %1674 = vmatprep.mubr.bf16.mxu0 %v755_v30 }
 0x1d1   :  { %v652_v35 = vadd.f32 %v1633_v34, %v2182_v52  ;;  %v643_v36 = vpop.f32.mrb[15].mxu1  ;;  %1675 = vmatmul.mubr.bf16.gmra.mrb[40].mxu0 %v756_v29  ;;  %v733_v38 = vmax.f32 %v649_v44, 0.0 }
 0x1d2   :  { %v644_v37 = vadd.f32 %v2182_v52, %v643_v36  ;;  %1797 = vmatpush3.bf16.msra.mxu0 %v2154_v45  ;;  %v731_v40 = vmax.f32 %v641_v33, 0.0 }
 0x1d3   :  { %v734_v39 = vmax.f32 %v652_v35, 0.0  ;;  %1799 = vmatprep.subr.bf16.mxu0 %v2164_v48 }
 0x1d4   :  { %v732_v41 = vmax.f32 %v644_v37, 0.0  ;;  %v1098_v37 = vld [vmem:[%s2478_s8 + $0x70] sm:$0xff] }
 0x1d5   :  { %v758_v42 = vpack.c.bf16 %v734_v39, %v733_v38  ;;  %v1099_v38 = vld [vmem:[%s2478_s8 + $0x78] sm:$0xff] }
 0x1d6   :  { %v757_v43 = vpack.c.bf16 %v732_v41, %v731_v40  ;;  %v1636_v46 = vpop.f32.mrb[16].mxu1  ;;  %1801 = vmatpush3.bf16.msra.mxu0 %v2164_v48  ;;  %v1806_v39 = vpack.c.bf16 %v1099_v38, %v1098_v37  ;;  %v2240_v40 = vld [vmem:[%s2481_s6] ss:$0 sm:$0xff] }
 0x1d7   :  { %v665_v47 = vadd.f32 %v1636_v46, %v2182_v52  ;;  %v656_v49 = vpop.f32.mrb[17].mxu1  ;;  %1803 = vmatprep.subr.bf16.mxu0 %v2174_v51  ;;  %v2245_v41 = vld [vmem:[%s2482_s7] ss:$0 sm:$0xff] }
 0x1d8   :  { %v657_v50 = vadd.f32 %v2182_v52, %v656_v49  ;;  %v1637_v53 = vpop.f32.mrb[18].mxu1  ;;  %1678 = vmatprep.mubr.bf16.mxu0 %v757_v43  ;;  %1817 = vmatprep.subr.bf16.mxu1 %v1806_v39 }
 0x1d9   :  { %v668_v45 = vadd.f32 %v1637_v53, %v2182_v52  ;;  %v659_v54 = vpop.f32.mrb[19].mxu1  ;;  %1679 = vmatmul.mubr.bf16.gmra.mrb[44].mxu0 %v758_v42  ;;  %v737_v56 = vmax.f32 %v665_v47, 0.0  ;;  %1825 = vmatpush3.bf16.msra.mxu1 %v1806_v39 }
 0x1da   :  { %v660_v55 = vadd.f32 %v2182_v52, %v659_v54  ;;  %1805 = vmatpush3.bf16.msra.mxu0 %v2174_v51  ;;  %v735_v48 = vmax.f32 %v657_v50, 0.0 }
 0x1db   :  { %v738_v57 = vmax.f32 %v668_v45, 0.0  ;;  %1807 = vmatprep.subr.bf16.mxu0 %v1806_v39 }
 0x1dc   :  { %v736_v58 = vmax.f32 %v660_v55, 0.0 }
 0x1dd   :  { %v760_v59 = vpack.c.bf16 %v738_v57, %v737_v56 }
 0x1de   :  { %v759_v60 = vpack.c.bf16 %v736_v58, %v735_v48  ;;  %v1640_v61 = vpop.f32.mrb[20].mxu1  ;;  %1809 = vmatpush3.bf16.msra.mxu0 %v1806_v39 }
 0x1df   :  { %v681_v62 = vadd.f32 %v1640_v61, %v2182_v52  ;;  %v672_v63 = vpop.f32.mrb[21].mxu1 }
 0x1e0   :  { %v673_v0 = vadd.f32 %v2182_v52, %v672_v63  ;;  %v1641_v1 = vpop.f32.mrb[22].mxu1  ;;  %1682 = vmatprep.mubr.bf16.mxu0 %v759_v60 }
 0x1e1   :  { %v684_v2 = vadd.f32 %v1641_v1, %v2182_v52  ;;  %v675_v3 = vpop.f32.mrb[23].mxu1  ;;  %1683 = vmatmul.mubr.bf16.gmra.mrb[48].mxu0 %v760_v59  ;;  %v741_v4 = vmax.f32 %v681_v62, 0.0 }
 0x1e2   :  { %v676_v51 = vadd.f32 %v2182_v52, %v675_v3  ;;  %v739_v6 = vmax.f32 %v673_v0, 0.0 }
 0x1e3   :  { %v742_v5 = vmax.f32 %v684_v2, 0.0 }
 0x1e4   :  { %v740_v7 = vmax.f32 %v676_v51, 0.0 }
 0x1e5   :  { %v762_v8 = vpack.c.bf16 %v742_v5, %v741_v4 }
 0x1e6   :  { %v761_v9 = vpack.c.bf16 %v740_v7, %v739_v6  ;;  %v1644_v10 = vpop.f32.mrb[24].mxu1 }
 0x1e7   :  { %v697_v11 = vadd.f32 %v1644_v10, %v2182_v52  ;;  %v688_v12 = vpop.f32.mrb[25].mxu1 }
 0x1e8   :  { %v689_v13 = vadd.f32 %v2182_v52, %v688_v12  ;;  %v1645_v14 = vpop.f32.mrb[26].mxu1  ;;  %1686 = vmatprep.mubr.bf16.mxu0 %v761_v9 }
 0x1e9   :  { %v700_v15 = vadd.f32 %v1645_v14, %v2182_v52  ;;  %v691_v16 = vpop.f32.mrb[27].mxu1  ;;  %1687 = vmatmul.mubr.bf16.gmra.mrb[52].mxu0 %v762_v8  ;;  %v745_v18 = vmax.f32 %v697_v11, 0.0 }
 0x1ea   :  { %v692_v17 = vadd.f32 %v2182_v52, %v691_v16  ;;  %v743_v20 = vmax.f32 %v689_v13, 0.0 }
 0x1eb   :  { %v746_v19 = vmax.f32 %v700_v15, 0.0 }
 0x1ec   :  { %v744_v21 = vmax.f32 %v692_v17, 0.0 }
 0x1ed   :  { %v764_v22 = vpack.c.bf16 %v746_v19, %v745_v18 }
 0x1ee   :  { %v763_v23 = vpack.c.bf16 %v744_v21, %v743_v20  ;;  %v1648_v24 = vpop.f32.mrb[28].mxu1 }
 0x1ef   :  { %v713_v25 = vadd.f32 %v1648_v24, %v2182_v52  ;;  %v704_v26 = vpop.f32.mrb[29].mxu1 }
 0x1f0   :  { %v705_v27 = vadd.f32 %v2182_v52, %v704_v26  ;;  %v1649_v28 = vpop.f32.mrb[30].mxu1  ;;  %1690 = vmatprep.mubr.bf16.mxu0 %v763_v23 }
 0x1f1   :  { %v716_v29 = vadd.f32 %v1649_v28, %v2182_v52  ;;  %v707_v30 = vpop.f32.mrb[31].mxu1  ;;  %1691 = vmatmul.mubr.bf16.gmra.mrb[56].mxu0 %v764_v22  ;;  %v749_v44 = vmax.f32 %v713_v25, 0.0 }
 0x1f2   :  { %v708_v31 = vadd.f32 %v2182_v52, %v707_v30  ;;  %v747_v33 = vmax.f32 %v705_v27, 0.0  ;;  %v15_v52 = vstv %s2480_s9 }
 0x1f3   :  { %v750_v32 = vmax.f32 %v716_v29, 0.0  ;;  %16 = vst [vmem:[#allocation2] sm:$0x1] %v15_v52 }
 0x1f4   :  { %v748_v34 = vmax.f32 %v708_v31, 0.0 }
 0x1f5   :  { %v766_v35 = vpack.c.bf16 %v750_v32, %v749_v44 }
 0x1f6   :  { %v765_v36 = vpack.c.bf16 %v748_v34, %v747_v33 }
 0x1f8   :  { %1694 = vmatprep.mubr.bf16.mxu0 %v765_v36 }
 0x1f9   :  { %1695 = vmatmul.mubr.bf16.gmra.mrb[60].mxu0 %v766_v35 }
 0x294   :  { %v1668_v42 = vpop.f32.mrb[32].mxu0 }
 0x295   :  { %v984_v43 = vmul.f32 %v1668_v42, %v2240_v40  ;;  %v849_v46 = vpop.f32.mrb[33].mxu0 }
 0x296   :  { %v982_v47 = vmul.f32 %v2240_v40, %v849_v46  ;;  %v1669_v49 = vpop.f32.mrb[34].mxu0 }
 0x297   :  { %v1022_v50 = vadd.f32 %v2245_v41, %v984_v43  ;;  %v985_v53 = vmul.f32 %v1669_v49, %v2240_v40  ;;  %v852_v45 = vpop.f32.mrb[35].mxu0 }
 0x298   :  { %v1020_v54 = vadd.f32 %v2245_v41, %v982_v47  ;;  %v983_v55 = vmul.f32 %v2240_v40, %v852_v45 }
 0x299   :  { %v1054_v56 = vmax.f32 %v1022_v50, 0.0  ;;  %v1023_v57 = vadd.f32 %v2245_v41, %v985_v53 }
 0x29a   :  { %v1052_v48 = vmax.f32 %v1020_v54, 0.0  ;;  %v1021_v58 = vadd.f32 %v2245_v41, %v983_v55 }
 0x29b   :  { %v1055_v59 = vmax.f32 %v1023_v57, 0.0  ;;  %1733 = vmatprep.mubr.f32.mxu1 %v1054_v56 }
 0x29c   :  { %v1053_v60 = vmax.f32 %v1021_v58, 0.0  ;;  %v1672_v61 = vpop.f32.mrb[36].mxu0  ;;  %1730 = vmatprep.mubr.f32.mxu0 %v1052_v48 }
 0x29d   :  { %v988_v62 = vmul.f32 %v1672_v61, %v2240_v40  ;;  %v865_v63 = vpop.f32.mrb[37].mxu0  ;;  %1734 = vmatmul.mubr.f32.vlgmr.msra.gmra.mrb[32].mxu1 %v1055_v59 }
 0x29e   :  { %v986_v0 = vmul.f32 %v2240_v40, %v865_v63  ;;  %v1673_v1 = vpop.f32.mrb[38].mxu0  ;;  %1731 = vmatmul.mubr.f32.vlgmr.msra.gmra.mrb[64].mxu0 %v1053_v60 }
 0x29f   :  { %v868_v2 = vpop.f32.mrb[39].mxu0  ;;  %v989_v51 = vmul.f32 %v1673_v1, %v2240_v40  ;;  %v1026_v5 = vadd.f32 %v2245_v41, %v988_v62 }
 0x2a0   :  { %v1024_v3 = vadd.f32 %v2245_v41, %v986_v0  ;;  %v987_v4 = vmul.f32 %v2240_v40, %v868_v2 }
 0x2a1   :  { %v1027_v8 = vadd.f32 %v2245_v41, %v989_v51  ;;  %v1058_v11 = vmax.f32 %v1026_v5, 0.0 }
 0x2a2   :  { %v1056_v6 = vmax.f32 %v1024_v3, 0.0  ;;  %v1025_v7 = vadd.f32 %v2245_v41, %v987_v4 }
 0x2a3   :  { %v1059_v17 = vmax.f32 %v1027_v8, 0.0 }
 0x2a4   :  { %v1057_v9 = vmax.f32 %v1025_v7, 0.0  ;;  %v1676_v10 = vpop.f32.mrb[40].mxu0  ;;  %1736 = vmatprep.mubr.f32.mxu1 %v1056_v6 }
 0x2a5   :  { %v992_v12 = vmul.f32 %v1676_v10, %v2240_v40  ;;  %v881_v13 = vpop.f32.mrb[41].mxu0 }
 0x2a6   :  { %v990_v14 = vmul.f32 %v2240_v40, %v881_v13  ;;  %v1677_v15 = vpop.f32.mrb[42].mxu0  ;;  %1737 = vmatmul.mubr.f32.gmra.mrb[34].mxu1 %v1057_v9 }
 0x2a7   :  { %v884_v16 = vpop.f32.mrb[43].mxu0  ;;  %1739 = vmatprep.mubr.f32.mxu1 %v1058_v11  ;;  %v993_v19 = vmul.f32 %v1677_v15, %v2240_v40  ;;  %v1030_v21 = vadd.f32 %v2245_v41, %v992_v12 }
 0x2a8   :  { %v1028_v18 = vadd.f32 %v2245_v41, %v990_v14  ;;  %v991_v20 = vmul.f32 %v2240_v40, %v884_v16 }
 0x2a9   :  { %v1031_v24 = vadd.f32 %v2245_v41, %v993_v19  ;;  %v1062_v27 = vmax.f32 %v1030_v21, 0.0 }
 0x2aa   :  { %v1060_v22 = vmax.f32 %v1028_v18, 0.0  ;;  %v1029_v23 = vadd.f32 %v2245_v41, %v991_v20  ;;  %1740 = vmatmul.mubr.f32.gmra.mrb[36].mxu1 %v1059_v17 }
 0x2ab   :  { %v1063_v32 = vmax.f32 %v1031_v24, 0.0 }
 0x2ac   :  { %v1061_v25 = vmax.f32 %v1029_v23, 0.0  ;;  %v1680_v26 = vpop.f32.mrb[44].mxu0  ;;  %1742 = vmatprep.mubr.f32.mxu1 %v1060_v22 }
 0x2ad   :  { %v996_v28 = vmul.f32 %v1680_v26, %v2240_v40  ;;  %v897_v29 = vpop.f32.mrb[45].mxu0 }
 0x2ae   :  { %v994_v30 = vmul.f32 %v2240_v40, %v897_v29  ;;  %v1681_v31 = vpop.f32.mrb[46].mxu0  ;;  %1743 = vmatmul.mubr.f32.gmra.mrb[38].mxu1 %v1061_v25 }
 0x2af   :  { %v900_v44 = vpop.f32.mrb[47].mxu0  ;;  %1745 = vmatprep.mubr.f32.mxu1 %v1062_v27  ;;  %v997_v34 = vmul.f32 %v1681_v31, %v2240_v40  ;;  %v1034_v36 = vadd.f32 %v2245_v41, %v996_v28 }
 0x2b0   :  { %v1032_v33 = vadd.f32 %v2245_v41, %v994_v30  ;;  %v995_v35 = vmul.f32 %v2240_v40, %v900_v44 }
 0x2b1   :  { %v1035_v39 = vadd.f32 %v2245_v41, %v997_v34  ;;  %v1066_v43 = vmax.f32 %v1034_v36, 0.0 }
 0x2b2   :  { %v1064_v37 = vmax.f32 %v1032_v33, 0.0  ;;  %v1033_v38 = vadd.f32 %v2245_v41, %v995_v35  ;;  %1746 = vmatmul.mubr.f32.gmra.mrb[40].mxu1 %v1063_v32 }
 0x2b3   :  { %v1067_v45 = vmax.f32 %v1035_v39, 0.0 }
 0x2b4   :  { %v1065_v52 = vmax.f32 %v1033_v38, 0.0  ;;  %v1684_v42 = vpop.f32.mrb[48].mxu0  ;;  %1748 = vmatprep.mubr.f32.mxu1 %v1064_v37 }
 0x2b5   :  { %v1000_v46 = vmul.f32 %v1684_v42, %v2240_v40  ;;  %v913_v47 = vpop.f32.mrb[49].mxu0 }
 0x2b6   :  { %v998_v49 = vmul.f32 %v2240_v40, %v913_v47  ;;  %v1685_v50 = vpop.f32.mrb[50].mxu0  ;;  %1749 = vmatmul.mubr.f32.gmra.mrb[42].mxu1 %v1065_v52 }
 0x2b7   :  { %v916_v53 = vpop.f32.mrb[51].mxu0  ;;  %1751 = vmatprep.mubr.f32.mxu1 %v1066_v43  ;;  %v1001_v55 = vmul.f32 %v1685_v50, %v2240_v40  ;;  %v1038_v57 = vadd.f32 %v2245_v41, %v1000_v46 }
 0x2b8   :  { %v1036_v54 = vadd.f32 %v2245_v41, %v998_v49  ;;  %v999_v56 = vmul.f32 %v2240_v40, %v916_v53  ;;  %v2311_v49 = vld [vmem:[#allocation2] ss:$0 sm:$0xff] }
 0x2b9   :  { %v1039_v59 = vadd.f32 %v2245_v41, %v1001_v55  ;;  %v1070_v62 = vmax.f32 %v1038_v57, 0.0 }
 0x2ba   :  { %v1068_v48 = vmax.f32 %v1036_v54, 0.0  ;;  %v1037_v58 = vadd.f32 %v2245_v41, %v999_v56  ;;  %1752 = vmatmul.mubr.f32.gmra.mrb[44].mxu1 %v1067_v45 }
 0x2bb   :  { %v1071_v51 = vmax.f32 %v1039_v59, 0.0 }
 0x2bc   :  { %v1069_v60 = vmax.f32 %v1037_v58, 0.0  ;;  %v1688_v61 = vpop.f32.mrb[52].mxu0  ;;  %1754 = vmatprep.mubr.f32.mxu1 %v1068_v48 }
 0x2bd   :  { %v1004_v63 = vmul.f32 %v1688_v61, %v2240_v40  ;;  %v929_v0 = vpop.f32.mrb[53].mxu0 }
 0x2be   :  { %v1002_v1 = vmul.f32 %v2240_v40, %v929_v0  ;;  %v1689_v2 = vpop.f32.mrb[54].mxu0  ;;  %1755 = vmatmul.mubr.f32.gmra.mrb[46].mxu1 %v1069_v60 }
 0x2bf   :  { %v932_v3 = vpop.f32.mrb[55].mxu0  ;;  %1757 = vmatprep.mubr.f32.mxu1 %v1070_v62  ;;  %v1005_v5 = vmul.f32 %v1689_v2, %v2240_v40  ;;  %v1042_v7 = vadd.f32 %v2245_v41, %v1004_v63 }
 0x2c0   :  { %v1040_v4 = vadd.f32 %v2245_v41, %v1002_v1  ;;  %v1003_v6 = vmul.f32 %v2240_v40, %v932_v3 }
 0x2c1   :  { %v1043_v10 = vadd.f32 %v2245_v41, %v1005_v5  ;;  %v1074_v13 = vmax.f32 %v1042_v7, 0.0 }
 0x2c2   :  { %v1072_v8 = vmax.f32 %v1040_v4, 0.0  ;;  %v1041_v9 = vadd.f32 %v2245_v41, %v1003_v6  ;;  %1758 = vmatmul.mubr.f32.gmra.mrb[48].mxu1 %v1071_v51 }
 0x2c3   :  { %v1075_v19 = vmax.f32 %v1043_v10, 0.0 }
 0x2c4   :  { %v1073_v11 = vmax.f32 %v1041_v9, 0.0  ;;  %v1692_v12 = vpop.f32.mrb[56].mxu0  ;;  %1760 = vmatprep.mubr.f32.mxu1 %v1072_v8 }
 0x2c5   :  { %v1008_v14 = vmul.f32 %v1692_v12, %v2240_v40  ;;  %v945_v15 = vpop.f32.mrb[57].mxu0 }
 0x2c6   :  { %v1006_v16 = vmul.f32 %v2240_v40, %v945_v15  ;;  %v1693_v17 = vpop.f32.mrb[58].mxu0  ;;  %1761 = vmatmul.mubr.f32.gmra.mrb[50].mxu1 %v1073_v11 }
 0x2c7   :  { %v948_v18 = vpop.f32.mrb[59].mxu0  ;;  %1763 = vmatprep.mubr.f32.mxu1 %v1074_v13  ;;  %v1009_v21 = vmul.f32 %v1693_v17, %v2240_v40  ;;  %v1046_v23 = vadd.f32 %v2245_v41, %v1008_v14 }
 0x2c8   :  { %v1044_v20 = vadd.f32 %v2245_v41, %v1006_v16  ;;  %v1007_v22 = vmul.f32 %v2240_v40, %v948_v18 }
 0x2c9   :  { %v1047_v26 = vadd.f32 %v2245_v41, %v1009_v21  ;;  %v1078_v29 = vmax.f32 %v1046_v23, 0.0 }
 0x2ca   :  { %v1076_v24 = vmax.f32 %v1044_v20, 0.0  ;;  %v1045_v25 = vadd.f32 %v2245_v41, %v1007_v22  ;;  %1764 = vmatmul.mubr.f32.gmra.mrb[52].mxu1 %v1075_v19 }
 0x2cb   :  { %v1079_v34 = vmax.f32 %v1047_v26, 0.0 }
 0x2cc   :  { %v1077_v27 = vmax.f32 %v1045_v25, 0.0  ;;  %v1696_v28 = vpop.f32.mrb[60].mxu0  ;;  %1766 = vmatprep.mubr.f32.mxu1 %v1076_v24 }
 0x2cd   :  { %v1012_v30 = vmul.f32 %v1696_v28, %v2240_v40  ;;  %v961_v31 = vpop.f32.mrb[61].mxu0 }
 0x2ce   :  { %v1010_v44 = vmul.f32 %v2240_v40, %v961_v31  ;;  %v1697_v32 = vpop.f32.mrb[62].mxu0  ;;  %1767 = vmatmul.mubr.f32.gmra.mrb[54].mxu1 %v1077_v27 }
 0x2cf   :  { %v964_v33 = vpop.f32.mrb[63].mxu0  ;;  %1769 = vmatprep.mubr.f32.mxu1 %v1078_v29  ;;  %v1013_v36 = vmul.f32 %v1697_v32, %v2240_v40  ;;  %v1050_v38 = vadd.f32 %v2245_v41, %v1012_v30 }
 0x2d0   :  { %v1048_v35 = vadd.f32 %v2245_v41, %v1010_v44  ;;  %v1011_v37 = vmul.f32 %v2240_v40, %v964_v33 }
 0x2d1   :  { %v1051_v42 = vadd.f32 %v2245_v41, %v1013_v36  ;;  %v1082_v46 = vmax.f32 %v1050_v38, 0.0 }
 0x2d2   :  { %v1080_v39 = vmax.f32 %v1048_v35, 0.0  ;;  %v1049_v52 = vadd.f32 %v2245_v41, %v1011_v37  ;;  %1770 = vmatmul.mubr.f32.gmra.mrb[56].mxu1 %v1079_v34 }
 0x2d3   :  { %v1083_v47 = vmax.f32 %v1051_v42, 0.0 }
 0x2d4   :  { %v1081_v43 = vmax.f32 %v1049_v52, 0.0  ;;  %1772 = vmatprep.mubr.f32.mxu1 %v1080_v39 }
 0x2d6   :  { %1773 = vmatmul.mubr.f32.gmra.mrb[58].mxu1 %v1081_v43 }
 0x2d7   :  { %1775 = vmatprep.mubr.f32.mxu1 %v1082_v46 }
 0x2da   :  { %1776 = vmatmul.mubr.f32.gmra.mrb[60].mxu1 %v1083_v47 }
 0x370   :  { %v1735_v50 = vpop.f32.mrb[32].mxu1 }
 0x371   :  { %v1189_v40 = vadd.f32 %v1735_v50, %v2311_v49  ;;  %v1732_v53 = vpop.f32.mrb[64].mxu0  ;;  %v1183_v45 = vpop.f32.mrb[33].mxu1 }
 0x372   :  { %v1179_v54 = vadd.f32 %v1732_v53, %v2311_v49  ;;  %v1184_v55 = vadd.f32 %v2311_v49, %v1183_v45  ;;  %v1173_v41 = vpop.f32.mrb[65].mxu0 }
 0x373   :  { %1336 = vst.msk [vmem:[%s2483_s10 + $0x18] sm:$0xff] %vm1332_vm3, %v1189_v40  ;;  %v1174_v56 = vadd.f32 %v2311_v49, %v1173_v41 }
 0x374   :  { %1334 = vst.msk [vmem:[%s2483_s10 + $0x8] sm:$0xff] %vm1332_vm3, %v1179_v54  ;;  %1335 = vst.msk [vmem:[%s2483_s10 + $0x10] sm:$0xff] %vm1332_vm3, %v1184_v55 }
 0x375   :  { %1333 = vst.msk [vmem:[%s2483_s10] sm:$0xff] %vm1332_vm3, %v1174_v56 }
 0x379   :  { %v1738_v57 = vpop.f32.mrb[34].mxu1 }
 0x37a   :  { %v1199_v48 = vadd.f32 %v1738_v57, %v2311_v49  ;;  %v1193_v58 = vpop.f32.mrb[35].mxu1 }
 0x37b   :  { %v1194_v59 = vadd.f32 %v2311_v49, %v1193_v58 }
 0x37c   :  { %1338 = vst.msk [vmem:[%s2483_s10 + $0x28] sm:$0xff] %vm1332_vm3, %v1199_v48 }
 0x37d   :  { %1337 = vst.msk [vmem:[%s2483_s10 + $0x20] sm:$0xff] %vm1332_vm3, %v1194_v59  ;;  %v1741_v60 = vpop.f32.mrb[36].mxu1 }
 0x37e   :  { %v1209_v61 = vadd.f32 %v1741_v60, %v2311_v49  ;;  %v1203_v62 = vpop.f32.mrb[37].mxu1 }
 0x37f   :  { %v1204_v63 = vadd.f32 %v2311_v49, %v1203_v62 }
 0x380   :  { %1340 = vst.msk [vmem:[%s2483_s10 + $0x38] sm:$0xff] %vm1332_vm3, %v1209_v61 }
 0x381   :  { %1339 = vst.msk [vmem:[%s2483_s10 + $0x30] sm:$0xff] %vm1332_vm3, %v1204_v63  ;;  %v1744_v0 = vpop.f32.mrb[38].mxu1 }
 0x382   :  { %v1219_v1 = vadd.f32 %v1744_v0, %v2311_v49  ;;  %v1213_v2 = vpop.f32.mrb[39].mxu1 }
 0x383   :  { %v1214_v3 = vadd.f32 %v2311_v49, %v1213_v2 }
 0x384   :  { %1342 = vst.msk [vmem:[%s2483_s10 + $0x48] sm:$0xff] %vm1332_vm3, %v1219_v1 }
 0x385   :  { %1341 = vst.msk [vmem:[%s2483_s10 + $0x40] sm:$0xff] %vm1332_vm3, %v1214_v3  ;;  %v1747_v51 = vpop.f32.mrb[40].mxu1 }
 0x386   :  { %v1229_v4 = vadd.f32 %v1747_v51, %v2311_v49  ;;  %v1223_v5 = vpop.f32.mrb[41].mxu1 }
 0x387   :  { %v1224_v6 = vadd.f32 %v2311_v49, %v1223_v5 }
 0x388   :  { %1344 = vst.msk [vmem:[%s2483_s10 + $0x58] sm:$0xff] %vm1332_vm3, %v1229_v4 }
 0x389   :  { %1343 = vst.msk [vmem:[%s2483_s10 + $0x50] sm:$0xff] %vm1332_vm3, %v1224_v6  ;;  %v1750_v7 = vpop.f32.mrb[42].mxu1 }
 0x38a   :  { %v1239_v8 = vadd.f32 %v1750_v7, %v2311_v49  ;;  %v1233_v9 = vpop.f32.mrb[43].mxu1 }
 0x38b   :  { %v1234_v10 = vadd.f32 %v2311_v49, %v1233_v9 }
 0x38c   :  { %1346 = vst.msk [vmem:[%s2483_s10 + $0x68] sm:$0xff] %vm1332_vm3, %v1239_v8 }
 0x38d   :  { %1345 = vst.msk [vmem:[%s2483_s10 + $0x60] sm:$0xff] %vm1332_vm3, %v1234_v10  ;;  %v1753_v11 = vpop.f32.mrb[44].mxu1 }
 0x38e   :  { %v1249_v12 = vadd.f32 %v1753_v11, %v2311_v49  ;;  %v1243_v13 = vpop.f32.mrb[45].mxu1 }
 0x38f   :  { %v1244_v14 = vadd.f32 %v2311_v49, %v1243_v13 }
 0x390   :  { %1348 = vst.msk [vmem:[%s2483_s10 + $0x78] sm:$0xff] %vm1332_vm3, %v1249_v12 }
 0x391   :  { %1347 = vst.msk [vmem:[%s2483_s10 + $0x70] sm:$0xff] %vm1332_vm3, %v1244_v14  ;;  %v1756_v15 = vpop.f32.mrb[46].mxu1 }
 0x392   :  { %v1259_v16 = vadd.f32 %v1756_v15, %v2311_v49  ;;  %v1253_v17 = vpop.f32.mrb[47].mxu1 }
 0x393   :  { %v1254_v18 = vadd.f32 %v2311_v49, %v1253_v17 }
 0x394   :  { %1350 = vst.msk [vmem:[%s2483_s10 + $0x88] sm:$0xff] %vm1332_vm3, %v1259_v16 }
 0x395   :  { %1349 = vst.msk [vmem:[%s2483_s10 + $0x80] sm:$0xff] %vm1332_vm3, %v1254_v18  ;;  %v1759_v19 = vpop.f32.mrb[48].mxu1 }
 0x396   :  { %v1269_v20 = vadd.f32 %v1759_v19, %v2311_v49  ;;  %v1263_v21 = vpop.f32.mrb[49].mxu1 }
 0x397   :  { %v1264_v22 = vadd.f32 %v2311_v49, %v1263_v21 }
 0x398   :  { %1352 = vst.msk [vmem:[%s2483_s10 + $0x98] sm:$0xff] %vm1332_vm3, %v1269_v20 }
 0x399   :  { %1351 = vst.msk [vmem:[%s2483_s10 + $0x90] sm:$0xff] %vm1332_vm3, %v1264_v22  ;;  %v1762_v23 = vpop.f32.mrb[50].mxu1 }
 0x39a   :  { %v1279_v24 = vadd.f32 %v1762_v23, %v2311_v49  ;;  %v1273_v25 = vpop.f32.mrb[51].mxu1 }
 0x39b   :  { %v1274_v26 = vadd.f32 %v2311_v49, %v1273_v25 }
 0x39c   :  { %1354 = vst.msk [vmem:[%s2483_s10 + $0xa8] sm:$0xff] %vm1332_vm3, %v1279_v24 }
 0x39d   :  { %1353 = vst.msk [vmem:[%s2483_s10 + $0xa0] sm:$0xff] %vm1332_vm3, %v1274_v26  ;;  %v1765_v27 = vpop.f32.mrb[52].mxu1 }
 0x39e   :  { %v1289_v28 = vadd.f32 %v1765_v27, %v2311_v49  ;;  %v1283_v29 = vpop.f32.mrb[53].mxu1 }
 0x39f   :  { %v1284_v30 = vadd.f32 %v2311_v49, %v1283_v29 }
 0x3a0   :  { %1356 = vst.msk [vmem:[%s2483_s10 + $0xb8] sm:$0xff] %vm1332_vm3, %v1289_v28 }
 0x3a1   :  { %1355 = vst.msk [vmem:[%s2483_s10 + $0xb0] sm:$0xff] %vm1332_vm3, %v1284_v30  ;;  %v1768_v31 = vpop.f32.mrb[54].mxu1 }
 0x3a2   :  { %v1299_v44 = vadd.f32 %v1768_v31, %v2311_v49  ;;  %v1293_v32 = vpop.f32.mrb[55].mxu1 }
 0x3a3   :  { %v1294_v33 = vadd.f32 %v2311_v49, %v1293_v32 }
 0x3a4   :  { %1358 = vst.msk [vmem:[%s2483_s10 + $0xc8] sm:$0xff] %vm1332_vm3, %v1299_v44 }
 0x3a5   :  { %1357 = vst.msk [vmem:[%s2483_s10 + $0xc0] sm:$0xff] %vm1332_vm3, %v1294_v33  ;;  %v1771_v34 = vpop.f32.mrb[56].mxu1 }
 0x3a6   :  { %v1309_v35 = vadd.f32 %v1771_v34, %v2311_v49  ;;  %v1303_v36 = vpop.f32.mrb[57].mxu1 }
 0x3a7   :  { %v1304_v37 = vadd.f32 %v2311_v49, %v1303_v36 }
 0x3a8   :  { %1360 = vst.msk [vmem:[%s2483_s10 + $0xd8] sm:$0xff] %vm1332_vm3, %v1309_v35 }
 0x3a9   :  { %1359 = vst.msk [vmem:[%s2483_s10 + $0xd0] sm:$0xff] %vm1332_vm3, %v1304_v37  ;;  %v1774_v38 = vpop.f32.mrb[58].mxu1 }
 0x3aa   :  { %v1319_v39 = vadd.f32 %v1774_v38, %v2311_v49  ;;  %v1313_v52 = vpop.f32.mrb[59].mxu1 }
 0x3ab   :  { %v1314_v42 = vadd.f32 %v2311_v49, %v1313_v52 }
 0x3ac   :  { %1362 = vst.msk [vmem:[%s2483_s10 + $0xe8] sm:$0xff] %vm1332_vm3, %v1319_v39 }
 0x3ad   :  { %1361 = vst.msk [vmem:[%s2483_s10 + $0xe0] sm:$0xff] %vm1332_vm3, %v1314_v42  ;;  %v1777_v43 = vpop.f32.mrb[60].mxu1 }
 0x3ae   :  { %v1329_v46 = vadd.f32 %v1777_v43, %v2311_v49  ;;  %v1323_v47 = vpop.f32.mrb[61].mxu1 }
 0x3af   :  { %v1324_v50 = vadd.f32 %v2311_v49, %v1323_v47 }
 0x3b0   :  { %1364 = vst.msk [vmem:[%s2483_s10 + $0xf8] sm:$0xff] %vm1332_vm3, %v1329_v46 }
 0x3b1   :  { %1363 = vst.msk [vmem:[%s2483_s10 + $0xf0] sm:$0xff] %vm1332_vm3, %v1324_v50 }

</bundles_post_ra>
